<compile_context>
chip_gen: v7x
topology: tpu7x:2x2x1
jax: 0.10.0
libtpu: 0.0.40
codegen_flags: <defaults>
</compile_context>

<pallas_src>
import functools

import jax
import jax.numpy as jnp
from jax.experimental import pallas as pl
from jax.experimental.pallas import tpu as pltpu

INPUT_DIM = 1 + 1 + 1 * 2     # = 4   (from Context.__init__)
HIDDEN_DIM = 10
GATE_PAD = 128                # each GRU gate gets its own 128-lane vreg slot

# Row offsets inside the single packed parameter operand (width = 3 * GATE_PAD).
_P_WHH = 0                           # rows [0, 128)   : hidden->gates weights
_P_WIH = GATE_PAD                    # rows [128, 132) : input->gates weights
_P_BIH = GATE_PAD + INPUT_DIM        # row  132        : b_ih (+ b_hh for r,z)
_P_BHN = GATE_PAD + INPUT_DIM + 1    # row  133        : n-gate b_hh
_P_ROWS = GATE_PAD + INPUT_DIM + 2   # = 134 rows total


def _gru_kernel(x_ref, p_ref, out_ref, *, batch, seq):
    """Whole-sequence GRU in one grid-free invocation.

    x_ref   : (S*B, D)  time-major flattened input rows (VMEM resident)
    p_ref   : (134, 3G) packed parameters (see _P_* row offsets above)
    out_ref : (B, G)    lane-dense final hidden state (cols >= H are zero)
    """
    G = GATE_PAD
    D = INPUT_DIM
    B = batch
    S = seq

    whh = p_ref[_P_WHH:_P_WHH + G, :]              # (G, 3G); rows >= H are zero
    wih = p_ref[_P_WIH:_P_WIH + D, :]              # (D, 3G)
    bih = p_ref[_P_BIH:_P_BIH + 1, :]              # (1, 3G); b_hh folded for r,z
    bhn = p_ref[_P_BHN:_P_BHN + 1, 2 * G:3 * G]    # (1, G);  n-gate hidden bias

    # Hoisted input projection for ALL time steps: one MXU push, no recurrence
    # dependency.  Rows are time-major, so per-step slices below are contiguous.
    gi = jnp.dot(x_ref[...], wih,
                 preferred_element_type=jnp.float32) + bih          # (S*B, 3G)

    # Hoist the n-gate bias broadcast out of the unrolled recurrence.
    bhn_b = jnp.broadcast_to(bhn, (B, G))                            # (B, G)

    # Padded hidden state; lanes H..G-1 remain exactly 0 through the loop
    # (r_pad = z_pad = 0.5, n_pad = 0  =>  h_pad' = 0.5 * h_pad = 0).
    h = jnp.zeros((B, G), jnp.float32)

    for t in range(S):                # S is tiny and static -> full unroll
        git = gi[t * B:(t + 1) * B, :]                               # (B, 3G)
        gh = jnp.dot(h, whh, preferred_element_type=jnp.float32)     # (B, 3G)
        r = jax.nn.sigmoid(git[:, 0:G] + gh[:, 0:G])
        z = jax.nn.sigmoid(git[:, G:2 * G] + gh[:, G:2 * G])
        n = jnp.tanh(git[:, 2 * G:3 * G] + r * (gh[:, 2 * G:3 * G] + bhn_b))
        h = (1.0 - z) * n + z * h

    out_ref[...] = h                  # lane-dense (B, 128), unmasked store


def prepare_context_params(w_ih, w_hh, b_ih, b_hh):
    """One-time (init-time) packing of nn.GRU parameters.

    w_ih: (3H, D), w_hh: (3H, H), b_ih/b_hh: (3H,), torch gate order r|z|n.
    Returns a single (134, 3*128) f32 array; gate g lives at columns
    [g*128, g*128 + H).  b_hh is folded into b_ih for the r and z gates
    (they are summed before the sigmoid); the n-gate b_hh stays separate
    because it sits inside the r * (...) term.
    """
    f32 = jnp.float32
    H, D, G = HIDDEN_DIM, INPUT_DIM, GATE_PAD
    w_ih = jnp.asarray(w_ih, f32)
    w_hh = jnp.asarray(w_hh, f32)
    b_ih = jnp.asarray(b_ih, f32)
    b_hh = jnp.asarray(b_hh, f32)

    p = jnp.zeros((_P_ROWS, 3 * G), f32)
    for g in range(3):
        p = p.at[_P_WHH:_P_WHH + H, g * G:g * G + H].set(w_hh[g * H:(g + 1) * H, :].T)
        p = p.at[_P_WIH:_P_WIH + D, g * G:g * G + H].set(w_ih[g * H:(g + 1) * H, :].T)
    p = p.at[_P_BIH, 0 * G:0 * G + H].set(b_ih[0 * H:1 * H] + b_hh[0 * H:1 * H])
    p = p.at[_P_BIH, 1 * G:1 * G + H].set(b_ih[1 * H:2 * H] + b_hh[1 * H:2 * H])
    p = p.at[_P_BIH, 2 * G:2 * G + H].set(b_ih[2 * H:3 * H])
    p = p.at[_P_BHN, 2 * G:2 * G + H].set(b_hh[2 * H:3 * H])
    return p


@jax.jit
def context_forward(history_input, packed_params):
    """history_input: (batch, seq, input_dim) -> (batch, hidden_dim)."""
    B, S, D = history_input.shape
    G = GATE_PAD
    # Time-major flat rows so the kernel's per-step gate slice is a contiguous
    # static sublane block (no stride-S gather on the serial recurrence).
    x_tm = jnp.transpose(history_input.astype(jnp.float32),
                         (1, 0, 2)).reshape(S * B, D)

    vmem = pl.BlockSpec(memory_space=pltpu.MemorySpace.VMEM)
    out_pad = pl.pallas_call(
        functools.partial(_gru_kernel, batch=B, seq=S),
        out_shape=jax.ShapeDtypeStruct((B, G), jnp.float32),
        in_specs=[vmem, vmem],
        out_specs=vmem,
    )(x_tm, packed_params)
    # Lane-dense kernel output; this slice fuses into the jitted executable.
    return out_pad[:, :HIDDEN_DIM]


def _gru_reference(x, w_ih, w_hh, b_ih, b_hh):
    """Pure-JAX reference matching torch.nn.GRU semantics (gate order r, z, n)."""
    B, S, D = x.shape
    H = HIDDEN_DIM
    h = jnp.zeros((B, H), jnp.float32)
    for t in range(S):
        xt = x[:, t, :]
        gi = xt @ w_ih.T + b_ih
        gh = h @ w_hh.T + b_hh
        r = jax.nn.sigmoid(gi[:, :H] + gh[:, :H])
        z = jax.nn.sigmoid(gi[:, H:2 * H] + gh[:, H:2 * H])
        n = jnp.tanh(gi[:, 2 * H:] + r * gh[:, 2 * H:])
        h = (1.0 - z) * n + z * h
    return h


if __name__ == "__main__":
    key = jax.random.PRNGKey(0)
    k_x, k_wih, k_whh, k_bih, k_bhh = jax.random.split(key, 5)

    B, S, D, H = 2, 8, INPUT_DIM, HIDDEN_DIM

    # Deterministic synthetic parameters (shapes from nn.GRU(input=4, hidden=10)).
    scale = 1.0 / jnp.sqrt(H)
    w_ih = jax.random.uniform(k_wih, (3 * H, D), jnp.float32, -scale, scale)
    w_hh = jax.random.uniform(k_whh, (3 * H, H), jnp.float32, -scale, scale)
    b_ih = jax.random.uniform(k_bih, (3 * H,), jnp.float32, -scale, scale)
    b_hh = jax.random.uniform(k_bhh, (3 * H,), jnp.float32, -scale, scale)

    history_input = jax.random.normal(k_x, (B, S, D), jnp.float32)

    # One-time parameter packing (module-init analogue), then the fast path.
    packed = jax.block_until_ready(prepare_context_params(w_ih, w_hh, b_ih, b_hh))

    out = context_forward(history_input, packed)
    out = jax.block_until_ready(out)

    ref = _gru_reference(history_input, w_ih, w_hh, b_ih, b_hh)
    assert out.shape == (B, H)
    assert jnp.allclose(out, ref, atol=1e-5, rtol=1e-5), "mismatch vs reference GRU"

    print("KERNEL_OK")
</pallas_src>

<mosaic_0001>
module attributes {stable_mosaic.version = 11 : i64} {
  func.func @_gru_kernel(%arg0: memref<16x4xf32, #tpu.memory_space<vmem>>, %arg1: memref<134x384xf32, #tpu.memory_space<vmem>>, %arg2: memref<2x128xf32, #tpu.memory_space<vmem>>) attributes {dimension_semantics = [], scalar_prefetch = 0 : i64, scratch_operands = 0 : i64, tpu.core_type = #tpu.core_type<tc>} {
    %c0 = arith.constant 0 : index
    %c0_0 = arith.constant 0 : index
    %0 = vector.load %arg1[%c0, %c0_0] : memref<134x384xf32, #tpu.memory_space<vmem>>, vector<128x384xf32>
    %c128 = arith.constant 128 : index
    %c0_1 = arith.constant 0 : index
    %1 = vector.load %arg1[%c128, %c0_1] : memref<134x384xf32, #tpu.memory_space<vmem>>, vector<4x384xf32>
    %c132 = arith.constant 132 : index
    %c0_2 = arith.constant 0 : index
    %2 = vector.load %arg1[%c132, %c0_2] : memref<134x384xf32, #tpu.memory_space<vmem>>, vector<1x384xf32>
    %c133 = arith.constant 133 : index
    %c256 = arith.constant 256 : index
    %3 = vector.load %arg1[%c133, %c256] : memref<134x384xf32, #tpu.memory_space<vmem>>, vector<1x128xf32>
    %c0_3 = arith.constant 0 : index
    %c0_4 = arith.constant 0 : index
    %4 = vector.load %arg0[%c0_3, %c0_4] : memref<16x4xf32, #tpu.memory_space<vmem>>, vector<16x4xf32>
    %cst = arith.constant dense<0.000000e+00> : vector<16x384xf32>
    %5 = tpu.matmul %4, %1, %cst {dimension_numbers = #tpu.dot_dimension_numbers<[1], [0], [0], [1], [0, 0, 1, 1], [], []>} : vector<16x4xf32>, vector<4x384xf32>, vector<16x384xf32> -> vector<16x384xf32>
    %6 = vector.broadcast %2 : vector<1x384xf32> to vector<16x384xf32>
    %7 = arith.addf %5, %6 : vector<16x384xf32>
    %8 = vector.shape_cast %3 : vector<1x128xf32> to vector<1x128xf32>
    %9 = vector.broadcast %8 : vector<1x128xf32> to vector<2x128xf32>
    %cst_5 = arith.constant 0.000000e+00 : f32
    %10 = vector.broadcast %cst_5 : f32 to vector<2x128xf32>
    %11 = vector.extract_strided_slice %7 {offsets = [0, 0], sizes = [2, 384], strides = [1, 1]} : vector<16x384xf32> to vector<2x384xf32>
    %cst_6 = arith.constant dense<0.000000e+00> : vector<2x384xf32>
    %12 = tpu.matmul %10, %0, %cst_6 {dimension_numbers = #tpu.dot_dimension_numbers<[1], [0], [0], [1], [0, 0, 1, 1], [], []>} : vector<2x128xf32>, vector<128x384xf32>, vector<2x384xf32> -> vector<2x384xf32>
    %13 = vector.extract_strided_slice %11 {offsets = [0, 0], sizes = [2, 128], strides = [1, 1]} : vector<2x384xf32> to vector<2x128xf32>
    %14 = vector.extract_strided_slice %12 {offsets = [0, 0], sizes = [2, 128], strides = [1, 1]} : vector<2x384xf32> to vector<2x128xf32>
    %15 = arith.addf %13, %14 : vector<2x128xf32>
    %16 = arith.negf %15 : vector<2x128xf32>
    %17 = math.exp %16 : vector<2x128xf32>
    %cst_7 = arith.constant 1.000000e+00 : f32
    %18 = vector.broadcast %cst_7 : f32 to vector<2x128xf32>
    %19 = arith.addf %18, %17 : vector<2x128xf32>
    %20 = arith.divf %18, %19 : vector<2x128xf32>
    %21 = vector.extract_strided_slice %11 {offsets = [0, 128], sizes = [2, 128], strides = [1, 1]} : vector<2x384xf32> to vector<2x128xf32>
    %22 = vector.extract_strided_slice %12 {offsets = [0, 128], sizes = [2, 128], strides = [1, 1]} : vector<2x384xf32> to vector<2x128xf32>
    %23 = arith.addf %21, %22 : vector<2x128xf32>
    %24 = arith.negf %23 : vector<2x128xf32>
    %25 = math.exp %24 : vector<2x128xf32>
    %cst_8 = arith.constant 1.000000e+00 : f32
    %26 = vector.broadcast %cst_8 : f32 to vector<2x128xf32>
    %27 = arith.addf %26, %25 : vector<2x128xf32>
    %28 = arith.divf %26, %27 : vector<2x128xf32>
    %29 = vector.extract_strided_slice %11 {offsets = [0, 256], sizes = [2, 128], strides = [1, 1]} : vector<2x384xf32> to vector<2x128xf32>
    %30 = vector.extract_strided_slice %12 {offsets = [0, 256], sizes = [2, 128], strides = [1, 1]} : vector<2x384xf32> to vector<2x128xf32>
    %31 = arith.addf %30, %9 : vector<2x128xf32>
    %32 = arith.mulf %20, %31 : vector<2x128xf32>
    %33 = arith.addf %29, %32 : vector<2x128xf32>
    %34 = math.tanh %33 : vector<2x128xf32>
    %cst_9 = arith.constant 1.000000e+00 : f32
    %35 = vector.broadcast %cst_9 : f32 to vector<2x128xf32>
    %36 = arith.subf %35, %28 : vector<2x128xf32>
    %37 = arith.mulf %36, %34 : vector<2x128xf32>
    %38 = arith.mulf %28, %10 : vector<2x128xf32>
    %39 = arith.addf %37, %38 : vector<2x128xf32>
    %40 = vector.extract_strided_slice %7 {offsets = [2, 0], sizes = [2, 384], strides = [1, 1]} : vector<16x384xf32> to vector<2x384xf32>
    %cst_10 = arith.constant dense<0.000000e+00> : vector<2x384xf32>
    %41 = tpu.matmul %39, %0, %cst_10 {dimension_numbers = #tpu.dot_dimension_numbers<[1], [0], [0], [1], [0, 0, 1, 1], [], []>} : vector<2x128xf32>, vector<128x384xf32>, vector<2x384xf32> -> vector<2x384xf32>
    %42 = vector.extract_strided_slice %40 {offsets = [0, 0], sizes = [2, 128], strides = [1, 1]} : vector<2x384xf32> to vector<2x128xf32>
    %43 = vector.extract_strided_slice %41 {offsets = [0, 0], sizes = [2, 128], strides = [1, 1]} : vector<2x384xf32> to vector<2x128xf32>
    %44 = arith.addf %42, %43 : vector<2x128xf32>
    %45 = arith.negf %44 : vector<2x128xf32>
    %46 = math.exp %45 : vector<2x128xf32>
    %cst_11 = arith.constant 1.000000e+00 : f32
    %47 = vector.broadcast %cst_11 : f32 to vector<2x128xf32>
    %48 = arith.addf %47, %46 : vector<2x128xf32>
    %49 = arith.divf %47, %48 : vector<2x128xf32>
    %50 = vector.extract_strided_slice %40 {offsets = [0, 128], sizes = [2, 128], strides = [1, 1]} : vector<2x384xf32> to vector<2x128xf32>
    %51 = vector.extract_strided_slice %41 {offsets = [0, 128], sizes = [2, 128], strides = [1, 1]} : vector<2x384xf32> to vector<2x128xf32>
    %52 = arith.addf %50, %51 : vector<2x128xf32>
    %53 = arith.negf %52 : vector<2x128xf32>
    %54 = math.exp %53 : vector<2x128xf32>
    %cst_12 = arith.constant 1.000000e+00 : f32
    %55 = vector.broadcast %cst_12 : f32 to vector<2x128xf32>
    %56 = arith.addf %55, %54 : vector<2x128xf32>
    %57 = arith.divf %55, %56 : vector<2x128xf32>
    %58 = vector.extract_strided_slice %40 {offsets = [0, 256], sizes = [2, 128], strides = [1, 1]} : vector<2x384xf32> to vector<2x128xf32>
    %59 = vector.extract_strided_slice %41 {offsets = [0, 256], sizes = [2, 128], strides = [1, 1]} : vector<2x384xf32> to vector<2x128xf32>
    %60 = arith.addf %59, %9 : vector<2x128xf32>
    %61 = arith.mulf %49, %60 : vector<2x128xf32>
    %62 = arith.addf %58, %61 : vector<2x128xf32>
    %63 = math.tanh %62 : vector<2x128xf32>
    %cst_13 = arith.constant 1.000000e+00 : f32
    %64 = vector.broadcast %cst_13 : f32 to vector<2x128xf32>
    %65 = arith.subf %64, %57 : vector<2x128xf32>
    %66 = arith.mulf %65, %63 : vector<2x128xf32>
    %67 = arith.mulf %57, %39 : vector<2x128xf32>
    %68 = arith.addf %66, %67 : vector<2x128xf32>
    %69 = vector.extract_strided_slice %7 {offsets = [4, 0], sizes = [2, 384], strides = [1, 1]} : vector<16x384xf32> to vector<2x384xf32>
    %cst_14 = arith.constant dense<0.000000e+00> : vector<2x384xf32>
    %70 = tpu.matmul %68, %0, %cst_14 {dimension_numbers = #tpu.dot_dimension_numbers<[1], [0], [0], [1], [0, 0, 1, 1], [], []>} : vector<2x128xf32>, vector<128x384xf32>, vector<2x384xf32> -> vector<2x384xf32>
    %71 = vector.extract_strided_slice %69 {offsets = [0, 0], sizes = [2, 128], strides = [1, 1]} : vector<2x384xf32> to vector<2x128xf32>
    %72 = vector.extract_strided_slice %70 {offsets = [0, 0], sizes = [2, 128], strides = [1, 1]} : vector<2x384xf32> to vector<2x128xf32>
    %73 = arith.addf %71, %72 : vector<2x128xf32>
    %74 = arith.negf %73 : vector<2x128xf32>
    %75 = math.exp %74 : vector<2x128xf32>
    %cst_15 = arith.constant 1.000000e+00 : f32
    %76 = vector.broadcast %cst_15 : f32 to vector<2x128xf32>
    %77 = arith.addf %76, %75 : vector<2x128xf32>
    %78 = arith.divf %76, %77 : vector<2x128xf32>
    %79 = vector.extract_strided_slice %69 {offsets = [0, 128], sizes = [2, 128], strides = [1, 1]} : vector<2x384xf32> to vector<2x128xf32>
    %80 = vector.extract_strided_slice %70 {offsets = [0, 128], sizes = [2, 128], strides = [1, 1]} : vector<2x384xf32> to vector<2x128xf32>
    %81 = arith.addf %79, %80 : vector<2x128xf32>
    %82 = arith.negf %81 : vector<2x128xf32>
    %83 = math.exp %82 : vector<2x128xf32>
    %cst_16 = arith.constant 1.000000e+00 : f32
    %84 = vector.broadcast %cst_16 : f32 to vector<2x128xf32>
    %85 = arith.addf %84, %83 : vector<2x128xf32>
    %86 = arith.divf %84, %85 : vector<2x128xf32>
    %87 = vector.extract_strided_slice %69 {offsets = [0, 256], sizes = [2, 128], strides = [1, 1]} : vector<2x384xf32> to vector<2x128xf32>
    %88 = vector.extract_strided_slice %70 {offsets = [0, 256], sizes = [2, 128], strides = [1, 1]} : vector<2x384xf32> to vector<2x128xf32>
    %89 = arith.addf %88, %9 : vector<2x128xf32>
    %90 = arith.mulf %78, %89 : vector<2x128xf32>
    %91 = arith.addf %87, %90 : vector<2x128xf32>
    %92 = math.tanh %91 : vector<2x128xf32>
    %cst_17 = arith.constant 1.000000e+00 : f32
    %93 = vector.broadcast %cst_17 : f32 to vector<2x128xf32>
    %94 = arith.subf %93, %86 : vector<2x128xf32>
    %95 = arith.mulf %94, %92 : vector<2x128xf32>
    %96 = arith.mulf %86, %68 : vector<2x128xf32>
    %97 = arith.addf %95, %96 : vector<2x128xf32>
    %98 = vector.extract_strided_slice %7 {offsets = [6, 0], sizes = [2, 384], strides = [1, 1]} : vector<16x384xf32> to vector<2x384xf32>
    %cst_18 = arith.constant dense<0.000000e+00> : vector<2x384xf32>
    %99 = tpu.matmul %97, %0, %cst_18 {dimension_numbers = #tpu.dot_dimension_numbers<[1], [0], [0], [1], [0, 0, 1, 1], [], []>} : vector<2x128xf32>, vector<128x384xf32>, vector<2x384xf32> -> vector<2x384xf32>
    %100 = vector.extract_strided_slice %98 {offsets = [0, 0], sizes = [2, 128], strides = [1, 1]} : vector<2x384xf32> to vector<2x128xf32>
    %101 = vector.extract_strided_slice %99 {offsets = [0, 0], sizes = [2, 128], strides = [1, 1]} : vector<2x384xf32> to vector<2x128xf32>
    %102 = arith.addf %100, %101 : vector<2x128xf32>
    %103 = arith.negf %102 : vector<2x128xf32>
    %104 = math.exp %103 : vector<2x128xf32>
    %cst_19 = arith.constant 1.000000e+00 : f32
    %105 = vector.broadcast %cst_19 : f32 to vector<2x128xf32>
    %106 = arith.addf %105, %104 : vector<2x128xf32>
    %107 = arith.divf %105, %106 : vector<2x128xf32>
    %108 = vector.extract_strided_slice %98 {offsets = [0, 128], sizes = [2, 128], strides = [1, 1]} : vector<2x384xf32> to vector<2x128xf32>
    %109 = vector.extract_strided_slice %99 {offsets = [0, 128], sizes = [2, 128], strides = [1, 1]} : vector<2x384xf32> to vector<2x128xf32>
    %110 = arith.addf %108, %109 : vector<2x128xf32>
    %111 = arith.negf %110 : vector<2x128xf32>
    %112 = math.exp %111 : vector<2x128xf32>
    %cst_20 = arith.constant 1.000000e+00 : f32
    %113 = vector.broadcast %cst_20 : f32 to vector<2x128xf32>
    %114 = arith.addf %113, %112 : vector<2x128xf32>
    %115 = arith.divf %113, %114 : vector<2x128xf32>
    %116 = vector.extract_strided_slice %98 {offsets = [0, 256], sizes = [2, 128], strides = [1, 1]} : vector<2x384xf32> to vector<2x128xf32>
    %117 = vector.extract_strided_slice %99 {offsets = [0, 256], sizes = [2, 128], strides = [1, 1]} : vector<2x384xf32> to vector<2x128xf32>
    %118 = arith.addf %117, %9 : vector<2x128xf32>
    %119 = arith.mulf %107, %118 : vector<2x128xf32>
    %120 = arith.addf %116, %119 : vector<2x128xf32>
    %121 = math.tanh %120 : vector<2x128xf32>
    %cst_21 = arith.constant 1.000000e+00 : f32
    %122 = vector.broadcast %cst_21 : f32 to vector<2x128xf32>
    %123 = arith.subf %122, %115 : vector<2x128xf32>
    %124 = arith.mulf %123, %121 : vector<2x128xf32>
    %125 = arith.mulf %115, %97 : vector<2x128xf32>
    %126 = arith.addf %124, %125 : vector<2x128xf32>
    %127 = vector.extract_strided_slice %7 {offsets = [8, 0], sizes = [2, 384], strides = [1, 1]} : vector<16x384xf32> to vector<2x384xf32>
    %cst_22 = arith.constant dense<0.000000e+00> : vector<2x384xf32>
    %128 = tpu.matmul %126, %0, %cst_22 {dimension_numbers = #tpu.dot_dimension_numbers<[1], [0], [0], [1], [0, 0, 1, 1], [], []>} : vector<2x128xf32>, vector<128x384xf32>, vector<2x384xf32> -> vector<2x384xf32>
    %129 = vector.extract_strided_slice %127 {offsets = [0, 0], sizes = [2, 128], strides = [1, 1]} : vector<2x384xf32> to vector<2x128xf32>
    %130 = vector.extract_strided_slice %128 {offsets = [0, 0], sizes = [2, 128], strides = [1, 1]} : vector<2x384xf32> to vector<2x128xf32>
    %131 = arith.addf %129, %130 : vector<2x128xf32>
    %132 = arith.negf %131 : vector<2x128xf32>
    %133 = math.exp %132 : vector<2x128xf32>
    %cst_23 = arith.constant 1.000000e+00 : f32
    %134 = vector.broadcast %cst_23 : f32 to vector<2x128xf32>
    %135 = arith.addf %134, %133 : vector<2x128xf32>
    %136 = arith.divf %134, %135 : vector<2x128xf32>
    %137 = vector.extract_strided_slice %127 {offsets = [0, 128], sizes = [2, 128], strides = [1, 1]} : vector<2x384xf32> to vector<2x128xf32>
    %138 = vector.extract_strided_slice %128 {offsets = [0, 128], sizes = [2, 128], strides = [1, 1]} : vector<2x384xf32> to vector<2x128xf32>
    %139 = arith.addf %137, %138 : vector<2x128xf32>
    %140 = arith.negf %139 : vector<2x128xf32>
    %141 = math.exp %140 : vector<2x128xf32>
    %cst_24 = arith.constant 1.000000e+00 : f32
    %142 = vector.broadcast %cst_24 : f32 to vector<2x128xf32>
    %143 = arith.addf %142, %141 : vector<2x128xf32>
    %144 = arith.divf %142, %143 : vector<2x128xf32>
    %145 = vector.extract_strided_slice %127 {offsets = [0, 256], sizes = [2, 128], strides = [1, 1]} : vector<2x384xf32> to vector<2x128xf32>
    %146 = vector.extract_strided_slice %128 {offsets = [0, 256], sizes = [2, 128], strides = [1, 1]} : vector<2x384xf32> to vector<2x128xf32>
    %147 = arith.addf %146, %9 : vector<2x128xf32>
    %148 = arith.mulf %136, %147 : vector<2x128xf32>
    %149 = arith.addf %145, %148 : vector<2x128xf32>
    %150 = math.tanh %149 : vector<2x128xf32>
    %cst_25 = arith.constant 1.000000e+00 : f32
    %151 = vector.broadcast %cst_25 : f32 to vector<2x128xf32>
    %152 = arith.subf %151, %144 : vector<2x128xf32>
    %153 = arith.mulf %152, %150 : vector<2x128xf32>
    %154 = arith.mulf %144, %126 : vector<2x128xf32>
    %155 = arith.addf %153, %154 : vector<2x128xf32>
    %156 = vector.extract_strided_slice %7 {offsets = [10, 0], sizes = [2, 384], strides = [1, 1]} : vector<16x384xf32> to vector<2x384xf32>
    %cst_26 = arith.constant dense<0.000000e+00> : vector<2x384xf32>
    %157 = tpu.matmul %155, %0, %cst_26 {dimension_numbers = #tpu.dot_dimension_numbers<[1], [0], [0], [1], [0, 0, 1, 1], [], []>} : vector<2x128xf32>, vector<128x384xf32>, vector<2x384xf32> -> vector<2x384xf32>
    %158 = vector.extract_strided_slice %156 {offsets = [0, 0], sizes = [2, 128], strides = [1, 1]} : vector<2x384xf32> to vector<2x128xf32>
    %159 = vector.extract_strided_slice %157 {offsets = [0, 0], sizes = [2, 128], strides = [1, 1]} : vector<2x384xf32> to vector<2x128xf32>
    %160 = arith.addf %158, %159 : vector<2x128xf32>
    %161 = arith.negf %160 : vector<2x128xf32>
    %162 = math.exp %161 : vector<2x128xf32>
    %cst_27 = arith.constant 1.000000e+00 : f32
    %163 = vector.broadcast %cst_27 : f32 to vector<2x128xf32>
    %164 = arith.addf %163, %162 : vector<2x128xf32>
    %165 = arith.divf %163, %164 : vector<2x128xf32>
    %166 = vector.extract_strided_slice %156 {offsets = [0, 128], sizes = [2, 128], strides = [1, 1]} : vector<2x384xf32> to vector<2x128xf32>
    %167 = vector.extract_strided_slice %157 {offsets = [0, 128], sizes = [2, 128], strides = [1, 1]} : vector<2x384xf32> to vector<2x128xf32>
    %168 = arith.addf %166, %167 : vector<2x128xf32>
    %169 = arith.negf %168 : vector<2x128xf32>
    %170 = math.exp %169 : vector<2x128xf32>
    %cst_28 = arith.constant 1.000000e+00 : f32
    %171 = vector.broadcast %cst_28 : f32 to vector<2x128xf32>
    %172 = arith.addf %171, %170 : vector<2x128xf32>
    %173 = arith.divf %171, %172 : vector<2x128xf32>
    %174 = vector.extract_strided_slice %156 {offsets = [0, 256], sizes = [2, 128], strides = [1, 1]} : vector<2x384xf32> to vector<2x128xf32>
    %175 = vector.extract_strided_slice %157 {offsets = [0, 256], sizes = [2, 128], strides = [1, 1]} : vector<2x384xf32> to vector<2x128xf32>
    %176 = arith.addf %175, %9 : vector<2x128xf32>
    %177 = arith.mulf %165, %176 : vector<2x128xf32>
    %178 = arith.addf %174, %177 : vector<2x128xf32>
    %179 = math.tanh %178 : vector<2x128xf32>
    %cst_29 = arith.constant 1.000000e+00 : f32
    %180 = vector.broadcast %cst_29 : f32 to vector<2x128xf32>
    %181 = arith.subf %180, %173 : vector<2x128xf32>
    %182 = arith.mulf %181, %179 : vector<2x128xf32>
    %183 = arith.mulf %173, %155 : vector<2x128xf32>
    %184 = arith.addf %182, %183 : vector<2x128xf32>
    %185 = vector.extract_strided_slice %7 {offsets = [12, 0], sizes = [2, 384], strides = [1, 1]} : vector<16x384xf32> to vector<2x384xf32>
    %cst_30 = arith.constant dense<0.000000e+00> : vector<2x384xf32>
    %186 = tpu.matmul %184, %0, %cst_30 {dimension_numbers = #tpu.dot_dimension_numbers<[1], [0], [0], [1], [0, 0, 1, 1], [], []>} : vector<2x128xf32>, vector<128x384xf32>, vector<2x384xf32> -> vector<2x384xf32>
    %187 = vector.extract_strided_slice %185 {offsets = [0, 0], sizes = [2, 128], strides = [1, 1]} : vector<2x384xf32> to vector<2x128xf32>
    %188 = vector.extract_strided_slice %186 {offsets = [0, 0], sizes = [2, 128], strides = [1, 1]} : vector<2x384xf32> to vector<2x128xf32>
    %189 = arith.addf %187, %188 : vector<2x128xf32>
    %190 = arith.negf %189 : vector<2x128xf32>
    %191 = math.exp %190 : vector<2x128xf32>
    %cst_31 = arith.constant 1.000000e+00 : f32
    %192 = vector.broadcast %cst_31 : f32 to vector<2x128xf32>
    %193 = arith.addf %192, %191 : vector<2x128xf32>
    %194 = arith.divf %192, %193 : vector<2x128xf32>
    %195 = vector.extract_strided_slice %185 {offsets = [0, 128], sizes = [2, 128], strides = [1, 1]} : vector<2x384xf32> to vector<2x128xf32>
    %196 = vector.extract_strided_slice %186 {offsets = [0, 128], sizes = [2, 128], strides = [1, 1]} : vector<2x384xf32> to vector<2x128xf32>
    %197 = arith.addf %195, %196 : vector<2x128xf32>
    %198 = arith.negf %197 : vector<2x128xf32>
    %199 = math.exp %198 : vector<2x128xf32>
    %cst_32 = arith.constant 1.000000e+00 : f32
    %200 = vector.broadcast %cst_32 : f32 to vector<2x128xf32>
    %201 = arith.addf %200, %199 : vector<2x128xf32>
    %202 = arith.divf %200, %201 : vector<2x128xf32>
    %203 = vector.extract_strided_slice %185 {offsets = [0, 256], sizes = [2, 128], strides = [1, 1]} : vector<2x384xf32> to vector<2x128xf32>
    %204 = vector.extract_strided_slice %186 {offsets = [0, 256], sizes = [2, 128], strides = [1, 1]} : vector<2x384xf32> to vector<2x128xf32>
    %205 = arith.addf %204, %9 : vector<2x128xf32>
    %206 = arith.mulf %194, %205 : vector<2x128xf32>
    %207 = arith.addf %203, %206 : vector<2x128xf32>
    %208 = math.tanh %207 : vector<2x128xf32>
    %cst_33 = arith.constant 1.000000e+00 : f32
    %209 = vector.broadcast %cst_33 : f32 to vector<2x128xf32>
    %210 = arith.subf %209, %202 : vector<2x128xf32>
    %211 = arith.mulf %210, %208 : vector<2x128xf32>
    %212 = arith.mulf %202, %184 : vector<2x128xf32>
    %213 = arith.addf %211, %212 : vector<2x128xf32>
    %214 = vector.extract_strided_slice %7 {offsets = [14, 0], sizes = [2, 384], strides = [1, 1]} : vector<16x384xf32> to vector<2x384xf32>
    %cst_34 = arith.constant dense<0.000000e+00> : vector<2x384xf32>
    %215 = tpu.matmul %213, %0, %cst_34 {dimension_numbers = #tpu.dot_dimension_numbers<[1], [0], [0], [1], [0, 0, 1, 1], [], []>} : vector<2x128xf32>, vector<128x384xf32>, vector<2x384xf32> -> vector<2x384xf32>
    %216 = vector.extract_strided_slice %214 {offsets = [0, 0], sizes = [2, 128], strides = [1, 1]} : vector<2x384xf32> to vector<2x128xf32>
    %217 = vector.extract_strided_slice %215 {offsets = [0, 0], sizes = [2, 128], strides = [1, 1]} : vector<2x384xf32> to vector<2x128xf32>
    %218 = arith.addf %216, %217 : vector<2x128xf32>
    %219 = arith.negf %218 : vector<2x128xf32>
    %220 = math.exp %219 : vector<2x128xf32>
    %cst_35 = arith.constant 1.000000e+00 : f32
    %221 = vector.broadcast %cst_35 : f32 to vector<2x128xf32>
    %222 = arith.addf %221, %220 : vector<2x128xf32>
    %223 = arith.divf %221, %222 : vector<2x128xf32>
    %224 = vector.extract_strided_slice %214 {offsets = [0, 128], sizes = [2, 128], strides = [1, 1]} : vector<2x384xf32> to vector<2x128xf32>
    %225 = vector.extract_strided_slice %215 {offsets = [0, 128], sizes = [2, 128], strides = [1, 1]} : vector<2x384xf32> to vector<2x128xf32>
    %226 = arith.addf %224, %225 : vector<2x128xf32>
    %227 = arith.negf %226 : vector<2x128xf32>
    %228 = math.exp %227 : vector<2x128xf32>
    %cst_36 = arith.constant 1.000000e+00 : f32
    %229 = vector.broadcast %cst_36 : f32 to vector<2x128xf32>
    %230 = arith.addf %229, %228 : vector<2x128xf32>
    %231 = arith.divf %229, %230 : vector<2x128xf32>
    %232 = vector.extract_strided_slice %214 {offsets = [0, 256], sizes = [2, 128], strides = [1, 1]} : vector<2x384xf32> to vector<2x128xf32>
    %233 = vector.extract_strided_slice %215 {offsets = [0, 256], sizes = [2, 128], strides = [1, 1]} : vector<2x384xf32> to vector<2x128xf32>
    %234 = arith.addf %233, %9 : vector<2x128xf32>
    %235 = arith.mulf %223, %234 : vector<2x128xf32>
    %236 = arith.addf %232, %235 : vector<2x128xf32>
    %237 = math.tanh %236 : vector<2x128xf32>
    %cst_37 = arith.constant 1.000000e+00 : f32
    %238 = vector.broadcast %cst_37 : f32 to vector<2x128xf32>
    %239 = arith.subf %238, %231 : vector<2x128xf32>
    %240 = arith.mulf %239, %237 : vector<2x128xf32>
    %241 = arith.mulf %231, %213 : vector<2x128xf32>
    %242 = arith.addf %240, %241 : vector<2x128xf32>
    %c0_38 = arith.constant 0 : index
    %c0_39 = arith.constant 0 : index
    %243 = vector.load %arg2[%c0_38, %c0_39] : memref<2x128xf32, #tpu.memory_space<vmem>>, vector<2x128xf32>
    tpu.vector_store %arg2[%c0_38, %c0_39], %242 {strides = array<i32>} : memref<2x128xf32, #tpu.memory_space<vmem>>, vector<2x128xf32>,
    return
  }
}

</mosaic_0001>

<bundles_post_ra>
// kernel: context_forward.1
= control target key start
LH: loop header
LB: loop body
LE: loop exit
PB: predicated region body
PF: predicated region fallthrough
CT: control target
= control target key end

     0   :  { %7 = vsyncpa [#allocation3], 0  ;;  %s3146_s0 = inlined_call_operand.vmem [shape: f32[16,4], index: 0, kind: input, shape index: {}]   ;;  %s3147_s1 = inlined_call_operand.hbm [shape: f32[134,384], index: 1, kind: input, shape index: {}]   ;;  %s3148_s2 = inlined_call_operand.hbm [shape: f32[2,128], index: 2, kind: output, shape index: {}]  }
   0x1   :  { %8 = vsyncpa [#allocation4], 0  ;;  %s2700_s9 = smov [#allocation2]   ;;  %s2652_s13 = scalar_lea.hbm %s3147_s1, 6528 }
   0x2   :  { %s16_s10 = sshll.u32 %s2700_s9, 4  ;;  %p2653_p0 = scmp.ne.s32.totalorder %s3147_s1, %s2652_s13  ;;  %s17_s10 = int_to_ptr.vmem [resolvable:$true] %s16_s10 }
   0x3   :  { %p2656_p1 = scmp.lt.u32.totalorder %s2652_s13, %s3147_s1 }
   0x5   :  { %p2658_p2 = pnand %p2656_p1, %p2653_p0 }
   0x7   :  { %2661 = shalt.err (!%p2658_p2)
}
   0x8   :  { %s2662_s18 = scalar_lea.vmem %s17_s10, 6528  ;;  %p2667_p4 = scmp.lt.s32.totalorder %s17_s10, %s17_s10 }
   0x9   :  { %p2663_p3 = scmp.ne.s32.totalorder %s17_s10, %s2662_s18  ;;  %p2668_p5 = scmp.lt.s32.totalorder %s2662_s18, %s2662_s18 }
   0xb   :  { %p2669_p6 = por %p2668_p5, %p2667_p4 }
   0xd   :  { %p2670_p7 = pnand %p2669_p6, %p2663_p3 }
   0xf   :  { %2673 = shalt.err (!%p2670_p7)
}
  0x10   :  { %s2701_s19 = smov 384   ;;  %s2702_s20 = smov 24  }
  0x11   :  { %22 = dma.hbm_to_vmem [thread:$0]  %s3147_s1, 6528, %s17_s10, [#allocation3], %s2701_s19, %s2701_s19, %s2702_s20  }
  0x12   :  { %2696 = dma.done.wait [#allocation3], 6528  }
  0x13   :  { %2697 = vsyncadd [#allocation3], 4294960768  ;;  %v2703_v0 = vmov 0.0   ;;  %vm105_vm0 = vcmask 1043456   ;;  %v75_v1 = vld [vmem:[#allocation2 + $0x188] sm:$0xf] }
  0x14   :  { %179 = vmatprep.mubr.f32.mxu0 %v2703_v0  ;;  %v74_v2 = vld [vmem:[#allocation2 + $0x180] sm:$0xf]  ;;  %vm98_vm1 = vcmask 31744   ;;  %1670 = vmatprep.subr.msk.mxu0 %vm105_vm0, %v75_v1  ;;  %v27_v4 = vld [vmem:[#allocation2 + $0x8] sm:$0xff]  ;;  %v29_v8 = vld [vmem:[#allocation2 + $0x18] sm:$0xff]  ;;  %v2704_v33 = vmov 0.0|0.0  }
  0x15   :  { %v80_v3 = vld [vmem:[%s3146_s0] sm:$0xff]  ;;  %1671 = vmatpush1.msk.msra.mxu0 %vm105_vm0, %v74_v2  ;;  %v33_v9 = vld [vmem:[#allocation2 + $0x38] sm:$0xff]  ;;  %v36_v10 = vld [vmem:[#allocation2 + $0x50] sm:$0xff]  ;;  %vm2705_vm2 = vmmov 0  }
  0x16   :  { %v30_v5 = vld [vmem:[#allocation2 + $0x20] sm:$0xff]  ;;  %1834 = vmatprep.mubr.msk.f32.mxu1 %vm98_vm1, %v80_v3  ;;  %1672 = vmatmul.mubr.msk.f32.vlgmr.msra.gmra.mrb[0].mxu0 %vm98_vm1, %v80_v3  ;;  %v2746_v12 = vpack.c.bf16 %v36_v10, %v33_v9  ;;  %v32_v13 = vld [vmem:[#allocation2 + $0x30] sm:$0xff]  ;;  %v35_v14 = vld [vmem:[#allocation2 + $0x48] sm:$0xff] }
  0x17   :  { %v26_v6 = vld [vmem:[#allocation2] sm:$0xff]  ;;  %v2741_v7 = vpack.c.bf16 %v30_v5, %v27_v4  ;;  %v39_v15 = vld [vmem:[#allocation2 + $0x68] sm:$0xff]  ;;  %185 = vmatprep.mubr.f32.mxu0 %v2703_v0  ;;  %v2751_v17 = vpack.c.bf16 %v35_v14, %v32_v13  ;;  %v41_v20 = vld [vmem:[#allocation2 + $0x78] sm:$0xff] }
  0x18   :  { %v2744_v11 = vpack.c.bf16 %v29_v8, %v26_v6  ;;  %v42_v16 = vld [vmem:[#allocation2 + $0x80] sm:$0xff]  ;;  %v45_v21 = vld [vmem:[#allocation2 + $0x98] sm:$0xff]  ;;  %v48_v22 = vld [vmem:[#allocation2 + $0xb0] sm:$0xff] }
  0x19   :  { %2118 = vmatprep.subr.bf16.mxu0 %v2741_v7  ;;  %v2754_v18 = vpack.c.bf16 %v42_v16, %v39_v15  ;;  %v38_v19 = vld [vmem:[#allocation2 + $0x60] sm:$0xff]  ;;  %v44_v24 = vld [vmem:[#allocation2 + $0x90] sm:$0xff]  ;;  %v2760_v26 = vpack.c.bf16 %v48_v22, %v45_v21  ;;  %v47_v27 = vld [vmem:[#allocation2 + $0xa8] sm:$0xff]  ;;  %v83_v21 = vlaneseq }
  0x1a   :  { %2120 = vmatpush1.bf16.msra.mxu0 %v2744_v11  ;;  %v2757_v23 = vpack.c.bf16 %v41_v20, %v38_v19  ;;  %v76_v25 = vld [vmem:[#allocation2 + $0x190] sm:$0xf]  ;;  %v51_v28 = vld [vmem:[#allocation2 + $0xc8] sm:$0xff]  ;;  %v54_v30 = vld [vmem:[#allocation2 + $0xe0] sm:$0xff]  ;;  %v2773_v35 = vpack.c.bf16 %v47_v27, %v44_v24 }
  0x1b   :  { %2122 = vmatprep.subr.bf16.mxu0 %v2746_v12  ;;  %1832 = vmatprep.subr.msk.mxu1 %vm105_vm0, %v76_v25  ;;  %v81_v29 = vld [vmem:[%s3146_s0 + $0x8] sm:$0xff]  ;;  %v28_v31 = vld [vmem:[#allocation2 + $0x10] sm:$0xff]  ;;  %v34_v36 = vld [vmem:[#allocation2 + $0x40] sm:$0xff]  ;;  %v2777_v38 = vpack.c.bf16 %v54_v30, %v51_v28  ;;  %v84_v22 = vshrl.u32 %v83_v21, 7  ;;  %s2706_s0 = smov [#allocation5]  }
  0x1c   :  { %1833 = vmatpush3.msk.msra.mxu1 %vm105_vm0, %v76_v25  ;;  %v31_v32 = vld [vmem:[#allocation2 + $0x28] sm:$0xff]  ;;  %1673 = vmatmul.mubr.msk.f32.gmra.mrb[2].mxu0 %vm98_vm1, %v81_v29  ;;  %v37_v37 = vld [vmem:[#allocation2 + $0x58] sm:$0xff]  ;;  %v50_v39 = vld [vmem:[#allocation2 + $0xc0] sm:$0xff]  ;;  %s1661_s26 = sshll.u32 %s2706_s0, 4  ;;  %s1662_s26 = int_to_ptr.vmem [resolvable:$true] %s1661_s26 }
  0x1d   :  { %2149 = vmatprep.subr.bf16.mxu1 %v2704_v33  ;;  %1835 = vmatmul.mubr.msk.f32.vlgmr.msra.gmra.mrb[0].mxu1 %vm98_vm1, %v81_v29  ;;  %v2770_v34 = vpack.c.bf16 %v31_v32, %v28_v31  ;;  %v53_v40 = vld [vmem:[#allocation2 + $0xd8] sm:$0xff]  ;;  %v2780_v42 = vpack.c.bf16 %v37_v37, %v34_v36  ;;  %v60_v43 = vld [vmem:[#allocation2 + $0x110] sm:$0xff]  ;;  %v43_v45 = vld [vmem:[#allocation2 + $0x88] sm:$0xff]  ;;  %v93_v27 = vsub.s32 2, %v84_v22  ;;  %v85_v28 = vsub.s32 0, %v84_v22  ;;  %s2674_s27 = scalar_lea.vmem %s1662_s26, 32  ;;  %p2679_p9 = scmp.lt.s32.totalorder %s1662_s26, %s1662_s26 }
  0x1e   :  { %2124 = vmatpush1.bf16.msra.mxu0 %v2751_v17  ;;  %331 = vmatprep.mubr.f32.mxu0 %v2703_v0  ;;  %v57_v41 = vld [vmem:[#allocation2 + $0xf8] sm:$0xff]  ;;  %v40_v44 = vld [vmem:[#allocation2 + $0x70] sm:$0xff]  ;;  %v2786_v46 = vpack.c.bf16 %v53_v40, %v50_v39  ;;  %v59_v49 = vld [vmem:[#allocation2 + $0x108] sm:$0xff]  ;;  %v89_v30 = vsub.s32 1, %v84_v22  ;;  %p2675_p8 = scmp.ne.s32.totalorder %s1662_s26, %s2674_s27  ;;  %p2680_p10 = scmp.lt.s32.totalorder %s2674_s27, %s2674_s27 }
  0x1f   :  { %2126 = vmatprep.subr.bf16.mxu0 %v2754_v18  ;;  %2151 = vmatpush3.bf16.msra.mxu1 %v2770_v34  ;;  %v2789_v47 = vpack.c.bf16 %v60_v43, %v57_v41  ;;  %v56_v48 = vld [vmem:[#allocation2 + $0xf0] sm:$0xff]  ;;  %v63_v50 = vld [vmem:[#allocation2 + $0x128] sm:$0xff]  ;;  %v2792_v51 = vpack.c.bf16 %v43_v45, %v40_v44  ;;  %v66_v52 = vld [vmem:[#allocation2 + $0x140] sm:$0xff] }
  0x20   :  { %2152 = vmatprep.subr.bf16.mxu1 %v2704_v33  ;;  %1869 = vmatprep.mubr.msk.f32.mxu1 %vm2705_vm2, %v2703_v0  ;;  %v46_v53 = vld [vmem:[#allocation2 + $0xa0] sm:$0xff]  ;;  %v49_v54 = vld [vmem:[#allocation2 + $0xb8] sm:$0xff]  ;;  %v2796_v55 = vpack.c.bf16 %v59_v49, %v56_v48  ;;  %v2799_v56 = vpack.c.bf16 %v66_v52, %v63_v50  ;;  %v72_v61 = vld [vmem:[#allocation2 + $0x170] sm:$0xff]  ;;  %p2681_p11 = por %p2680_p10, %p2679_p9 }
  0x21   :  { %v62_v57 = vld [vmem:[#allocation2 + $0x120] sm:$0xff]  ;;  %v65_v58 = vld [vmem:[#allocation2 + $0x138] sm:$0xff]  ;;  %v2802_v60 = vpack.c.bf16 %v49_v54, %v46_v53  ;;  %v52_v62 = vld [vmem:[#allocation2 + $0xd0] sm:$0xff] }
  0x22   :  { %2128 = vmatpush1.bf16.msra.mxu0 %v2757_v23  ;;  %v69_v59 = vld [vmem:[#allocation2 + $0x158] sm:$0xff]  ;;  %v55_v63 = vld [vmem:[#allocation2 + $0xe8] sm:$0xff]  ;;  %v2806_v1 = vpack.c.bf16 %v65_v58, %v62_v57  ;;  %v68_v3 = vld [vmem:[#allocation2 + $0x150] sm:$0xff]  ;;  %p2682_p12 = pnand %p2681_p11, %p2675_p8 }
  0x23   :  { %2130 = vmatprep.subr.bf16.mxu0 %v2760_v26  ;;  %2154 = vmatpush3.bf16.msra.mxu1 %v2780_v42  ;;  %v2809_v2 = vpack.c.bf16 %v72_v61, %v69_v59  ;;  %v71_v4 = vld [vmem:[#allocation2 + $0x168] sm:$0xff]  ;;  %v2812_v5 = vpack.c.bf16 %v55_v63, %v52_v62  ;;  %v58_v6 = vld [vmem:[#allocation2 + $0x100] sm:$0xff]  ;;  %v61_v8 = vld [vmem:[#allocation2 + $0x118] sm:$0xff] }
  0x24   :  { %2155 = vmatprep.subr.bf16.mxu1 %v2704_v33  ;;  %v2816_v9 = vpack.c.bf16 %v71_v4, %v68_v3  ;;  %v2820_v10 = vpack.c.bf16 %v61_v8, %v58_v6  ;;  %v64_v13 = vld [vmem:[#allocation2 + $0x130] sm:$0xff]  ;;  %v67_v14 = vld [vmem:[#allocation2 + $0x148] sm:$0xff]  ;;  %v70_v16 = vld [vmem:[#allocation2 + $0x160] sm:$0xff] }
  0x25   :  { %v2825_v15 = vpack.c.bf16 %v67_v14, %v64_v13  ;;  %v73_v19 = vld [vmem:[#allocation2 + $0x178] sm:$0xff]  ;;  %v78_v29 = vld [vmem:[#allocation2 + $0x184] ss:$8 sm:$0x7]  ;;  %v2884_v4 = vld [vmem:[#allocation2 + $0x195] ss:$0 sm:$0xff] }
  0x26   :  { %2132 = vmatpush1.bf16.msra.mxu0 %v2773_v35  ;;  %v2833_v20 = vpack.c.bf16 %v73_v19, %v70_v16  ;;  %v94_v31 = vrot.slane %v78_v29, %v93_v27  ;;  %v86_v32 = vrot.slane %v78_v29, %v85_v28  ;;  %v90_v36 = vrot.slane %v78_v29, %v89_v30 }
  0x27   :  { %2134 = vmatprep.subr.bf16.mxu0 %v2777_v38  ;;  %2157 = vmatpush3.bf16.msra.mxu1 %v2792_v51 }
  0x28   :  { %2158 = vmatprep.subr.bf16.mxu1 %v2704_v33 }
  0x2a   :  { %2136 = vmatpush1.bf16.msra.mxu0 %v2786_v46 }
  0x2b   :  { %2138 = vmatprep.subr.bf16.mxu0 %v2789_v47  ;;  %2160 = vmatpush3.bf16.msra.mxu1 %v2802_v60 }
  0x2c   :  { %2161 = vmatprep.subr.bf16.mxu1 %v2704_v33 }
  0x2e   :  { %2140 = vmatpush1.bf16.msra.mxu0 %v2796_v55 }
  0x2f   :  { %2142 = vmatprep.subr.bf16.mxu0 %v2799_v56  ;;  %2163 = vmatpush3.bf16.msra.mxu1 %v2812_v5 }
  0x30   :  { %2164 = vmatprep.subr.bf16.mxu1 %v2704_v33 }
  0x32   :  { %2144 = vmatpush1.bf16.msra.mxu0 %v2806_v1 }
  0x33   :  { %2146 = vmatprep.subr.bf16.mxu0 %v2809_v2  ;;  %2166 = vmatpush3.bf16.msra.mxu1 %v2820_v10 }
  0x34   :  { %2167 = vmatprep.subr.bf16.mxu1 %v2704_v33 }
  0x36   :  { %2148 = vmatpush1.bf16.msra.mxu0 %v2816_v9 }
  0x37   :  { %2174 = vmatprep.subr.bf16.mxu0 %v2741_v7  ;;  %2169 = vmatpush3.bf16.msra.mxu1 %v2825_v15 }
  0x38   :  { %2170 = vmatprep.subr.bf16.mxu1 %v2704_v33 }
  0x39   :  { %332 = vmatmul.mubr.f32.vlgmr.msra.gmra.mrb[4].mxu0 %v2703_v0 }
  0x3a   :  { %2176 = vmatpush1.bf16.msra.mxu0 %v2744_v11  ;;  %494 = vmatprep.mubr.f32.mxu0 %v2703_v0 }
  0x3b   :  { %2178 = vmatprep.subr.bf16.mxu0 %v2746_v12  ;;  %2172 = vmatpush3.bf16.msra.mxu1 %v2833_v20 }
  0x3c   :  { %2205 = vmatprep.subr.bf16.mxu1 %v2704_v33 }
  0x3e   :  { %2180 = vmatpush1.bf16.msra.mxu0 %v2751_v17  ;;  %1870 = vmatmul.mubr.f32.vlgmr.msra.gmra.mrb[2].mxu1 %v2703_v0 }
  0x3f   :  { %2182 = vmatprep.subr.bf16.mxu0 %v2754_v18  ;;  %2207 = vmatpush3.bf16.msra.mxu1 %v2770_v34 }
  0x40   :  { %2208 = vmatprep.subr.bf16.mxu1 %v2704_v33  ;;  %1904 = vmatprep.mubr.msk.f32.mxu1 %vm2705_vm2, %v2703_v0 }
  0x42   :  { %2184 = vmatpush1.bf16.msra.mxu0 %v2757_v23 }
  0x43   :  { %2186 = vmatprep.subr.bf16.mxu0 %v2760_v26  ;;  %2210 = vmatpush3.bf16.msra.mxu1 %v2780_v42 }
  0x44   :  { %2211 = vmatprep.subr.bf16.mxu1 %v2704_v33 }
  0x46   :  { %2188 = vmatpush1.bf16.msra.mxu0 %v2773_v35 }
  0x47   :  { %2190 = vmatprep.subr.bf16.mxu0 %v2777_v38  ;;  %2213 = vmatpush3.bf16.msra.mxu1 %v2792_v51 }
  0x48   :  { %2214 = vmatprep.subr.bf16.mxu1 %v2704_v33 }
  0x4a   :  { %2192 = vmatpush1.bf16.msra.mxu0 %v2786_v46 }
  0x4b   :  { %2194 = vmatprep.subr.bf16.mxu0 %v2789_v47  ;;  %2216 = vmatpush3.bf16.msra.mxu1 %v2802_v60 }
  0x4c   :  { %2217 = vmatprep.subr.bf16.mxu1 %v2704_v33 }
  0x4e   :  { %2196 = vmatpush1.bf16.msra.mxu0 %v2796_v55 }
  0x4f   :  { %2198 = vmatprep.subr.bf16.mxu0 %v2799_v56  ;;  %2219 = vmatpush3.bf16.msra.mxu1 %v2812_v5 }
  0x50   :  { %2220 = vmatprep.subr.bf16.mxu1 %v2704_v33 }
  0x52   :  { %2200 = vmatpush1.bf16.msra.mxu0 %v2806_v1 }
  0x53   :  { %2202 = vmatprep.subr.bf16.mxu0 %v2809_v2  ;;  %2222 = vmatpush3.bf16.msra.mxu1 %v2820_v10 }
  0x54   :  { %2223 = vmatprep.subr.bf16.mxu1 %v2704_v33 }
  0x56   :  { %2204 = vmatpush1.bf16.msra.mxu0 %v2816_v9 }
  0x57   :  { %2230 = vmatprep.subr.bf16.mxu0 %v2741_v7  ;;  %2225 = vmatpush3.bf16.msra.mxu1 %v2825_v15 }
  0x58   :  { %2226 = vmatprep.subr.bf16.mxu1 %v2704_v33 }
  0x5b   :  { %2228 = vmatpush3.bf16.msra.mxu1 %v2833_v20 }
  0x5c   :  { %2261 = vmatprep.subr.bf16.mxu1 %v2704_v33 }
  0xe9   :  { %v181_v24 = vpop.f32.mrb[0].mxu0 }
  0xea   :  { %v183_v25 = vpop.f32.mrb[1].mxu0  ;;  %v2878_v48 = vadd.f32 %v181_v24, %v86_v32 }
  0xeb   :  { %v2881_v53 = vadd.f32 %v183_v25, %v90_v36 }
  0xef   :  { %v187_v37 = vpop.f32.mrb[2].mxu0 }
  0xf0   :  { %v1836_v39 = vpop.f32.mrb[0].mxu1  ;;  %v2872_v40 = vadd.f32 %v187_v37, %v86_v32  ;;  %v189_v41 = vpop.f32.mrb[3].mxu0 }
  0xf1   :  { %v2874_v43 = vadd.f32 %v1836_v39, %v94_v31  ;;  %v258_v44 = vpop.f32.mrb[1].mxu1  ;;  %v2876_v45 = vadd.f32 %v189_v41, %v90_v36 }
  0xf2   :  { %v2887_v14 = vadd.f32 %v258_v44, %v94_v31 }
 0x10c   :  { %v333_v49 = vpop.f32.mrb[4].mxu0 }
 0x10d   :  { %v408_v50 = vadd.f32 %v333_v49, %v2878_v48  ;;  %v335_v52 = vpop.f32.mrb[5].mxu0 }
 0x10e   :  { %v415_v57 = vadd.f32 %v335_v52, %v2881_v53 }
 0x10f   :  { %v1677_v54 = vmul.f32 -1.442695, %v408_v50 }
 0x110   :  { %v1678_v58 = vmul.f32 -1.442695, %v415_v57 }
 0x111   :  { %2572 = vpow2.f32 %v1677_v54  ;;  %v404_v59 = vpop.f32.mrb[2].mxu1 }
 0x112   :  { %v1871_v61 = vpop.f32.mrb[3].mxu1  ;;  %2574 = vpow2.f32 %v1678_v58  ;;  %v422_v8 = vadd.f32 %v404_v59, %v2884_v4 }
 0x11b   :  { %v2573_v62 = vpop.eup %2572 }
 0x11c   :  { %v412_v63 = vadd.f32 1.0, %v2573_v62  ;;  %v2575_v3 = vpop.eup %2574 }
 0x11d   :  { %v419_v6 = vadd.f32 1.0, %v2575_v3 }
 0x11e   :  { %2576 = vrcp.f32 %v412_v63 }
 0x11f   :  { %2578 = vrcp.f32 %v419_v6 }
 0x128   :  { %v2577_v13 = vpop.eup %2576 }
 0x129   :  { %v423_v16 = vmul.f32 %v2577_v13, %v422_v8  ;;  %v2579_v21 = vpop.eup %2578 }
 0x12a   :  { %v426_v22 = vsub.f32 1.0, %v2579_v21  ;;  %v428_v27 = vmul.f32 0.0, %v2579_v21 }
 0x12b   :  { %v424_v19 = vadd.f32 %v423_v16, %v2887_v14 }
 0x12d   :  { %2580 = vtanh.f32 %v424_v19 }
 0x137   :  { %v2581_v24 = vpop.eup %2580 }
 0x138   :  { %v427_v25 = vmul.f32 %v2581_v24, %v426_v22 }
 0x13a   :  { %v429_v28 = vadd.f32 %v428_v27, %v427_v25 }
 0x13c   :  { %495 = vmatmul.mubr.f32.vlgmr.msra.gmra.mrb[6].mxu0 %v429_v28  ;;  %1905 = vmatmul.mubr.f32.vlgmr.msra.gmra.mrb[4].mxu1 %v429_v28  ;;  %v601_v62 = vrot.slane %v429_v28, 6 }
 0x13d   :  { %2232 = vmatpush1.bf16.msra.mxu0 %v2744_v11  ;;  %2263 = vmatpush3.bf16.msra.mxu1 %v2770_v34 }
 0x13e   :  { %2234 = vmatprep.subr.bf16.mxu0 %v2746_v12  ;;  %2264 = vmatprep.subr.bf16.mxu1 %v2704_v33 }
 0x13f   :  { %672 = vmatprep.mubr.f32.mxu0 %v2703_v0  ;;  %1939 = vmatprep.mubr.msk.f32.mxu1 %vm2705_vm2, %v2703_v0 }
 0x141   :  { %2236 = vmatpush1.bf16.msra.mxu0 %v2751_v17  ;;  %2266 = vmatpush3.bf16.msra.mxu1 %v2780_v42 }
 0x142   :  { %2238 = vmatprep.subr.bf16.mxu0 %v2754_v18  ;;  %2267 = vmatprep.subr.bf16.mxu1 %v2704_v33 }
 0x145   :  { %2240 = vmatpush1.bf16.msra.mxu0 %v2757_v23  ;;  %2269 = vmatpush3.bf16.msra.mxu1 %v2792_v51 }
 0x146   :  { %2242 = vmatprep.subr.bf16.mxu0 %v2760_v26  ;;  %2270 = vmatprep.subr.bf16.mxu1 %v2704_v33 }
 0x149   :  { %2244 = vmatpush1.bf16.msra.mxu0 %v2773_v35  ;;  %2272 = vmatpush3.bf16.msra.mxu1 %v2802_v60 }
 0x14a   :  { %2246 = vmatprep.subr.bf16.mxu0 %v2777_v38  ;;  %2273 = vmatprep.subr.bf16.mxu1 %v2704_v33 }
 0x14d   :  { %2248 = vmatpush1.bf16.msra.mxu0 %v2786_v46  ;;  %2275 = vmatpush3.bf16.msra.mxu1 %v2812_v5 }
 0x14e   :  { %2250 = vmatprep.subr.bf16.mxu0 %v2789_v47  ;;  %2276 = vmatprep.subr.bf16.mxu1 %v2704_v33 }
 0x151   :  { %2252 = vmatpush1.bf16.msra.mxu0 %v2796_v55  ;;  %2278 = vmatpush3.bf16.msra.mxu1 %v2820_v10 }
 0x152   :  { %2254 = vmatprep.subr.bf16.mxu0 %v2799_v56  ;;  %2279 = vmatprep.subr.bf16.mxu1 %v2704_v33 }
 0x155   :  { %2256 = vmatpush1.bf16.msra.mxu0 %v2806_v1  ;;  %2281 = vmatpush3.bf16.msra.mxu1 %v2825_v15 }
 0x156   :  { %2258 = vmatprep.subr.bf16.mxu0 %v2809_v2  ;;  %2282 = vmatprep.subr.bf16.mxu1 %v2704_v33 }
 0x159   :  { %2260 = vmatpush1.bf16.msra.mxu0 %v2816_v9  ;;  %2284 = vmatpush3.bf16.msra.mxu1 %v2833_v20 }
 0x15a   :  { %2286 = vmatprep.subr.bf16.mxu0 %v2741_v7  ;;  %2317 = vmatprep.subr.bf16.mxu1 %v2704_v33 }
 0x20f   :  { %v496_v29 = vpop.f32.mrb[6].mxu0  ;;  %v567_v30 = vpop.f32.mrb[4].mxu1 }
 0x210   :  { %v572_v31 = vrot.slane %v496_v29, 6  ;;  %v498_v32 = vpop.f32.mrb[7].mxu0  ;;  %v1906_v36 = vpop.f32.mrb[5].mxu1  ;;  %v591_v58 = vadd.f32 %v567_v30, %v2884_v4 }
 0x211   :  { %v582_v37 = vrot.slane %v498_v32, 6 }
 0x212   :  { %v574_v39 = vadd.f32 %v572_v31, %v2878_v48  ;;  %v593_v59 = vrot.slane %v591_v58, 6 }
 0x213   :  { %v584_v41 = vadd.f32 %v582_v37, %v2881_v53 }
 0x214   :  { %v1679_v44 = vmul.f32 -1.442695, %v574_v39 }
 0x215   :  { %v1680_v49 = vmul.f32 -1.442695, %v584_v41 }
 0x216   :  { %2582 = vpow2.f32 %v1679_v44 }
 0x217   :  { %2584 = vpow2.f32 %v1680_v49 }
 0x220   :  { %v2583_v50 = vpop.eup %2582 }
 0x221   :  { %v2585_v52 = vpop.eup %2584  ;;  %v578_v54 = vadd.f32 1.0, %v2583_v50 }
 0x222   :  { %v588_v57 = vadd.f32 1.0, %v2585_v52 }
 0x223   :  { %2586 = vrcp.f32 %v578_v54 }
 0x224   :  { %2588 = vrcp.f32 %v588_v57 }
 0x22d   :  { %v2587_v61 = vpop.eup %2586 }
 0x22e   :  { %v2589_v63 = vpop.eup %2588  ;;  %v595_v3 = vmul.f32 %v2587_v61, %v593_v59 }
 0x22f   :  { %v603_v6 = vmul.f32 %v2589_v63, %v601_v62  ;;  %v598_v13 = vsub.f32 1.0, %v2589_v63 }
 0x230   :  { %v596_v8 = vadd.f32 %v595_v3, %v2887_v14 }
 0x232   :  { %2590 = vtanh.f32 %v596_v8 }
 0x23c   :  { %v2591_v16 = vpop.eup %2590 }
 0x23d   :  { %v599_v19 = vmul.f32 %v2591_v16, %v598_v13 }
 0x23f   :  { %v2929_v21 = vadd.f32 %v603_v6, %v599_v19 }
 0x241   :  { %v606_v22 = vrot.slane %v2929_v21, 2  ;;  %v778_v57 = vrot.slane %v2929_v21, 6 }
 0x243   :  { %673 = vmatmul.mubr.f32.vlgmr.msra.gmra.mrb[8].mxu0 %v606_v22  ;;  %1940 = vmatmul.mubr.f32.vlgmr.msra.gmra.mrb[6].mxu1 %v606_v22 }
 0x244   :  { %2288 = vmatpush1.bf16.msra.mxu0 %v2744_v11  ;;  %2319 = vmatpush3.bf16.msra.mxu1 %v2770_v34 }
 0x245   :  { %2290 = vmatprep.subr.bf16.mxu0 %v2746_v12  ;;  %2320 = vmatprep.subr.bf16.mxu1 %v2704_v33 }
 0x246   :  { %849 = vmatprep.mubr.f32.mxu0 %v2703_v0  ;;  %1974 = vmatprep.mubr.msk.f32.mxu1 %vm2705_vm2, %v2703_v0 }
 0x248   :  { %2292 = vmatpush1.bf16.msra.mxu0 %v2751_v17  ;;  %2322 = vmatpush3.bf16.msra.mxu1 %v2780_v42 }
 0x249   :  { %2294 = vmatprep.subr.bf16.mxu0 %v2754_v18  ;;  %2323 = vmatprep.subr.bf16.mxu1 %v2704_v33 }
 0x24c   :  { %2296 = vmatpush1.bf16.msra.mxu0 %v2757_v23  ;;  %2325 = vmatpush3.bf16.msra.mxu1 %v2792_v51 }
 0x24d   :  { %2298 = vmatprep.subr.bf16.mxu0 %v2760_v26  ;;  %2326 = vmatprep.subr.bf16.mxu1 %v2704_v33 }
 0x250   :  { %2300 = vmatpush1.bf16.msra.mxu0 %v2773_v35  ;;  %2328 = vmatpush3.bf16.msra.mxu1 %v2802_v60 }
 0x251   :  { %2302 = vmatprep.subr.bf16.mxu0 %v2777_v38  ;;  %2329 = vmatprep.subr.bf16.mxu1 %v2704_v33 }
 0x254   :  { %2304 = vmatpush1.bf16.msra.mxu0 %v2786_v46  ;;  %2331 = vmatpush3.bf16.msra.mxu1 %v2812_v5 }
 0x255   :  { %2306 = vmatprep.subr.bf16.mxu0 %v2789_v47  ;;  %2332 = vmatprep.subr.bf16.mxu1 %v2704_v33 }
 0x258   :  { %2308 = vmatpush1.bf16.msra.mxu0 %v2796_v55  ;;  %2334 = vmatpush3.bf16.msra.mxu1 %v2820_v10 }
 0x259   :  { %2310 = vmatprep.subr.bf16.mxu0 %v2799_v56  ;;  %2335 = vmatprep.subr.bf16.mxu1 %v2704_v33 }
 0x25c   :  { %2312 = vmatpush1.bf16.msra.mxu0 %v2806_v1  ;;  %2337 = vmatpush3.bf16.msra.mxu1 %v2825_v15 }
 0x25d   :  { %2314 = vmatprep.subr.bf16.mxu0 %v2809_v2  ;;  %2338 = vmatprep.subr.bf16.mxu1 %v2704_v33 }
 0x260   :  { %2316 = vmatpush1.bf16.msra.mxu0 %v2816_v9  ;;  %2340 = vmatpush3.bf16.msra.mxu1 %v2833_v20 }
 0x261   :  { %2342 = vmatprep.subr.bf16.mxu0 %v2741_v7  ;;  %2373 = vmatprep.subr.bf16.mxu1 %v2704_v33 }
 0x316   :  { %v674_v24 = vpop.f32.mrb[8].mxu0  ;;  %v745_v25 = vpop.f32.mrb[6].mxu1 }
 0x317   :  { %v750_v27 = vrot.slane %v674_v24, 4  ;;  %v676_v28 = vpop.f32.mrb[9].mxu0  ;;  %v1941_v29 = vpop.f32.mrb[7].mxu1  ;;  %v769_v50 = vadd.f32 %v745_v25, %v2884_v4 }
 0x318   :  { %v760_v30 = vrot.slane %v676_v28, 4 }
 0x319   :  { %v752_v31 = vadd.f32 %v750_v27, %v2878_v48  ;;  %v771_v52 = vrot.slane %v769_v50, 4 }
 0x31a   :  { %v762_v32 = vadd.f32 %v760_v30, %v2881_v53 }
 0x31b   :  { %v1681_v36 = vmul.f32 -1.442695, %v752_v31 }
 0x31c   :  { %v1682_v37 = vmul.f32 -1.442695, %v762_v32 }
 0x31d   :  { %2592 = vpow2.f32 %v1681_v36 }
 0x31e   :  { %2594 = vpow2.f32 %v1682_v37 }
 0x327   :  { %v2593_v39 = vpop.eup %2592 }
 0x328   :  { %v2595_v41 = vpop.eup %2594  ;;  %v756_v44 = vadd.f32 1.0, %v2593_v39 }
 0x329   :  { %v766_v49 = vadd.f32 1.0, %v2595_v41 }
 0x32a   :  { %2596 = vrcp.f32 %v756_v44 }
 0x32b   :  { %2598 = vrcp.f32 %v766_v49 }
 0x334   :  { %v2597_v54 = vpop.eup %2596 }
 0x335   :  { %v2599_v58 = vpop.eup %2598  ;;  %v773_v59 = vmul.f32 %v2597_v54, %v771_v52 }
 0x336   :  { %v780_v61 = vmul.f32 %v2599_v58, %v778_v57  ;;  %v776_v63 = vsub.f32 1.0, %v2599_v58 }
 0x337   :  { %v774_v62 = vadd.f32 %v773_v59, %v2887_v14 }
 0x339   :  { %2600 = vtanh.f32 %v774_v62 }
 0x343   :  { %v2601_v3 = vpop.eup %2600 }
 0x344   :  { %v777_v6 = vmul.f32 %v2601_v3, %v776_v63 }
 0x346   :  { %v2972_v8 = vadd.f32 %v780_v61, %v777_v6 }
 0x348   :  { %v783_v13 = vrot.slane %v2972_v8, 4  ;;  %v955_v49 = vrot.slane %v2972_v8, 6 }
 0x34a   :  { %850 = vmatmul.mubr.f32.vlgmr.msra.gmra.mrb[10].mxu0 %v783_v13  ;;  %1975 = vmatmul.mubr.f32.vlgmr.msra.gmra.mrb[8].mxu1 %v783_v13 }
 0x34b   :  { %2344 = vmatpush1.bf16.msra.mxu0 %v2744_v11  ;;  %2375 = vmatpush3.bf16.msra.mxu1 %v2770_v34 }
 0x34c   :  { %2346 = vmatprep.subr.bf16.mxu0 %v2746_v12  ;;  %2376 = vmatprep.subr.bf16.mxu1 %v2704_v33 }
 0x34d   :  { %1026 = vmatprep.mubr.f32.mxu0 %v2703_v0  ;;  %2009 = vmatprep.mubr.msk.f32.mxu1 %vm2705_vm2, %v2703_v0 }
 0x34f   :  { %2348 = vmatpush1.bf16.msra.mxu0 %v2751_v17  ;;  %2378 = vmatpush3.bf16.msra.mxu1 %v2780_v42 }
 0x350   :  { %2350 = vmatprep.subr.bf16.mxu0 %v2754_v18  ;;  %2379 = vmatprep.subr.bf16.mxu1 %v2704_v33 }
 0x353   :  { %2352 = vmatpush1.bf16.msra.mxu0 %v2757_v23  ;;  %2381 = vmatpush3.bf16.msra.mxu1 %v2792_v51 }
 0x354   :  { %2354 = vmatprep.subr.bf16.mxu0 %v2760_v26  ;;  %2382 = vmatprep.subr.bf16.mxu1 %v2704_v33 }
 0x357   :  { %2356 = vmatpush1.bf16.msra.mxu0 %v2773_v35  ;;  %2384 = vmatpush3.bf16.msra.mxu1 %v2802_v60 }
 0x358   :  { %2358 = vmatprep.subr.bf16.mxu0 %v2777_v38  ;;  %2385 = vmatprep.subr.bf16.mxu1 %v2704_v33 }
 0x35b   :  { %2360 = vmatpush1.bf16.msra.mxu0 %v2786_v46  ;;  %2387 = vmatpush3.bf16.msra.mxu1 %v2812_v5 }
 0x35c   :  { %2362 = vmatprep.subr.bf16.mxu0 %v2789_v47  ;;  %2388 = vmatprep.subr.bf16.mxu1 %v2704_v33 }
 0x35f   :  { %2364 = vmatpush1.bf16.msra.mxu0 %v2796_v55  ;;  %2390 = vmatpush3.bf16.msra.mxu1 %v2820_v10 }
 0x360   :  { %2366 = vmatprep.subr.bf16.mxu0 %v2799_v56  ;;  %2391 = vmatprep.subr.bf16.mxu1 %v2704_v33 }
 0x363   :  { %2368 = vmatpush1.bf16.msra.mxu0 %v2806_v1  ;;  %2393 = vmatpush3.bf16.msra.mxu1 %v2825_v15 }
 0x364   :  { %2370 = vmatprep.subr.bf16.mxu0 %v2809_v2  ;;  %2394 = vmatprep.subr.bf16.mxu1 %v2704_v33 }
 0x367   :  { %2372 = vmatpush1.bf16.msra.mxu0 %v2816_v9  ;;  %2396 = vmatpush3.bf16.msra.mxu1 %v2833_v20 }
 0x368   :  { %2398 = vmatprep.subr.bf16.mxu0 %v2741_v7  ;;  %2429 = vmatprep.subr.bf16.mxu1 %v2704_v33 }
 0x41d   :  { %v851_v16 = vpop.f32.mrb[10].mxu0  ;;  %v922_v19 = vpop.f32.mrb[8].mxu1 }
 0x41e   :  { %v927_v21 = vrot.slane %v851_v16, 2  ;;  %v853_v22 = vpop.f32.mrb[11].mxu0  ;;  %v1976_v24 = vpop.f32.mrb[9].mxu1  ;;  %v946_v39 = vadd.f32 %v922_v19, %v2884_v4 }
 0x41f   :  { %v937_v25 = vrot.slane %v853_v22, 2 }
 0x420   :  { %v929_v27 = vadd.f32 %v927_v21, %v2878_v48  ;;  %v948_v41 = vrot.slane %v946_v39, 2 }
 0x421   :  { %v939_v28 = vadd.f32 %v937_v25, %v2881_v53 }
 0x422   :  { %v1683_v29 = vmul.f32 -1.442695, %v929_v27 }
 0x423   :  { %v1684_v30 = vmul.f32 -1.442695, %v939_v28 }
 0x424   :  { %2602 = vpow2.f32 %v1683_v29 }
 0x425   :  { %2604 = vpow2.f32 %v1684_v30 }
 0x42e   :  { %v2603_v31 = vpop.eup %2602 }
 0x42f   :  { %v2605_v32 = vpop.eup %2604  ;;  %v933_v36 = vadd.f32 1.0, %v2603_v31 }
 0x430   :  { %v943_v37 = vadd.f32 1.0, %v2605_v32 }
 0x431   :  { %2606 = vrcp.f32 %v933_v36 }
 0x432   :  { %2608 = vrcp.f32 %v943_v37 }
 0x43b   :  { %v2607_v44 = vpop.eup %2606 }
 0x43c   :  { %v2609_v50 = vpop.eup %2608  ;;  %v950_v48 = vmul.f32 %v2607_v44, %v948_v41 }
 0x43d   :  { %v957_v52 = vmul.f32 %v2609_v50, %v955_v49  ;;  %v953_v54 = vsub.f32 1.0, %v2609_v50 }
 0x43e   :  { %v951_v53 = vadd.f32 %v950_v48, %v2887_v14 }
 0x440   :  { %2610 = vtanh.f32 %v951_v53 }
 0x44a   :  { %v2611_v57 = vpop.eup %2610 }
 0x44b   :  { %v954_v58 = vmul.f32 %v2611_v57, %v953_v54 }
 0x44d   :  { %v958_v59 = vadd.f32 %v957_v52, %v954_v58 }
 0x44f   :  { %v960_v61 = vrot.slane %v958_v59, 6 }
 0x451   :  { %1027 = vmatmul.mubr.f32.vlgmr.msra.gmra.mrb[12].mxu0 %v960_v61  ;;  %2010 = vmatmul.mubr.f32.vlgmr.msra.gmra.mrb[10].mxu1 %v960_v61 }
 0x452   :  { %2400 = vmatpush1.bf16.msra.mxu0 %v2744_v11  ;;  %2431 = vmatpush3.bf16.msra.mxu1 %v2770_v34 }
 0x453   :  { %2402 = vmatprep.subr.bf16.mxu0 %v2746_v12  ;;  %2432 = vmatprep.subr.bf16.mxu1 %v2704_v33 }
 0x454   :  { %1189 = vmatprep.mubr.f32.mxu0 %v2703_v0  ;;  %2044 = vmatprep.mubr.msk.f32.mxu1 %vm2705_vm2, %v2703_v0 }
 0x456   :  { %2404 = vmatpush1.bf16.msra.mxu0 %v2751_v17  ;;  %2434 = vmatpush3.bf16.msra.mxu1 %v2780_v42 }
 0x457   :  { %2406 = vmatprep.subr.bf16.mxu0 %v2754_v18  ;;  %2435 = vmatprep.subr.bf16.mxu1 %v2704_v33 }
 0x45a   :  { %2408 = vmatpush1.bf16.msra.mxu0 %v2757_v23  ;;  %2437 = vmatpush3.bf16.msra.mxu1 %v2792_v51 }
 0x45b   :  { %2410 = vmatprep.subr.bf16.mxu0 %v2760_v26  ;;  %2438 = vmatprep.subr.bf16.mxu1 %v2704_v33 }
 0x45e   :  { %2412 = vmatpush1.bf16.msra.mxu0 %v2773_v35  ;;  %2440 = vmatpush3.bf16.msra.mxu1 %v2802_v60 }
 0x45f   :  { %2414 = vmatprep.subr.bf16.mxu0 %v2777_v38  ;;  %2441 = vmatprep.subr.bf16.mxu1 %v2704_v33 }
 0x462   :  { %2416 = vmatpush1.bf16.msra.mxu0 %v2786_v46  ;;  %2443 = vmatpush3.bf16.msra.mxu1 %v2812_v5 }
 0x463   :  { %2418 = vmatprep.subr.bf16.mxu0 %v2789_v47  ;;  %2444 = vmatprep.subr.bf16.mxu1 %v2704_v33 }
 0x466   :  { %2420 = vmatpush1.bf16.msra.mxu0 %v2796_v55  ;;  %2446 = vmatpush3.bf16.msra.mxu1 %v2820_v10 }
 0x467   :  { %2422 = vmatprep.subr.bf16.mxu0 %v2799_v56  ;;  %2447 = vmatprep.subr.bf16.mxu1 %v2704_v33 }
 0x46a   :  { %2424 = vmatpush1.bf16.msra.mxu0 %v2806_v1  ;;  %2449 = vmatpush3.bf16.msra.mxu1 %v2825_v15 }
 0x46b   :  { %2426 = vmatprep.subr.bf16.mxu0 %v2809_v2  ;;  %2450 = vmatprep.subr.bf16.mxu1 %v2704_v33 }
 0x46e   :  { %2428 = vmatpush1.bf16.msra.mxu0 %v2816_v9  ;;  %2452 = vmatpush3.bf16.msra.mxu1 %v2833_v20 }
 0x46f   :  { %2454 = vmatprep.subr.bf16.mxu0 %v2741_v7  ;;  %2485 = vmatprep.subr.bf16.mxu1 %v2704_v33 }
 0x524   :  { %v1028_v14 = vpop.f32.mrb[12].mxu0  ;;  %v1099_v62 = vpop.f32.mrb[10].mxu1 }
 0x525   :  { %v1103_v63 = vadd.f32 %v1028_v14, %v2872_v40  ;;  %v1030_v3 = vpop.f32.mrb[13].mxu0  ;;  %v2011_v6 = vpop.f32.mrb[11].mxu1  ;;  %v1117_v25 = vadd.f32 %v1099_v62, %v2884_v4 }
 0x526   :  { %v1110_v13 = vadd.f32 %v1030_v3, %v2876_v45 }
 0x527   :  { %v1685_v8 = vmul.f32 -1.442695, %v1103_v63 }
 0x528   :  { %v1686_v16 = vmul.f32 -1.442695, %v1110_v13 }
 0x529   :  { %2612 = vpow2.f32 %v1685_v8 }
 0x52a   :  { %2614 = vpow2.f32 %v1686_v16 }
 0x533   :  { %v2613_v19 = vpop.eup %2612 }
 0x534   :  { %v1107_v21 = vadd.f32 1.0, %v2613_v19  ;;  %v2615_v22 = vpop.eup %2614 }
 0x535   :  { %v1114_v24 = vadd.f32 1.0, %v2615_v22 }
 0x536   :  { %2616 = vrcp.f32 %v1107_v21 }
 0x537   :  { %2618 = vrcp.f32 %v1114_v24 }
 0x540   :  { %v2617_v27 = vpop.eup %2616 }
 0x541   :  { %v1118_v28 = vmul.f32 %v2617_v27, %v1117_v25  ;;  %v2619_v30 = vpop.eup %2618 }
 0x542   :  { %v1121_v31 = vsub.f32 1.0, %v2619_v30  ;;  %v1123_v37 = vmul.f32 %v2619_v30, %v960_v61 }
 0x543   :  { %v1119_v29 = vadd.f32 %v1118_v28, %v2874_v43 }
 0x545   :  { %2620 = vtanh.f32 %v1119_v29 }
 0x54f   :  { %v2621_v32 = vpop.eup %2620 }
 0x550   :  { %v1122_v36 = vmul.f32 %v2621_v32, %v1121_v31 }
 0x552   :  { %v1124_v39 = vadd.f32 %v1123_v37, %v1122_v36 }
 0x554   :  { %1190 = vmatmul.mubr.f32.vlgmr.msra.gmra.mrb[14].mxu0 %v1124_v39  ;;  %2045 = vmatmul.mubr.f32.vlgmr.msra.gmra.mrb[12].mxu1 %v1124_v39  ;;  %v1296_v6 = vrot.slane %v1124_v39, 6 }
 0x555   :  { %2456 = vmatpush1.bf16.msra.mxu0 %v2744_v11  ;;  %2487 = vmatpush3.bf16.msra.mxu1 %v2770_v34 }
 0x556   :  { %2458 = vmatprep.subr.bf16.mxu0 %v2746_v12  ;;  %2488 = vmatprep.subr.bf16.mxu1 %v2704_v33 }
 0x557   :  { %1367 = vmatprep.mubr.f32.mxu0 %v2703_v0  ;;  %2079 = vmatprep.mubr.msk.f32.mxu1 %vm2705_vm2, %v2703_v0 }
 0x559   :  { %2460 = vmatpush1.bf16.msra.mxu0 %v2751_v17  ;;  %2490 = vmatpush3.bf16.msra.mxu1 %v2780_v42 }
 0x55a   :  { %2462 = vmatprep.subr.bf16.mxu0 %v2754_v18  ;;  %2491 = vmatprep.subr.bf16.mxu1 %v2704_v33 }
 0x55d   :  { %2464 = vmatpush1.bf16.msra.mxu0 %v2757_v23  ;;  %2493 = vmatpush3.bf16.msra.mxu1 %v2792_v51 }
 0x55e   :  { %2466 = vmatprep.subr.bf16.mxu0 %v2760_v26  ;;  %2494 = vmatprep.subr.bf16.mxu1 %v2704_v33 }
 0x561   :  { %2468 = vmatpush1.bf16.msra.mxu0 %v2773_v35  ;;  %2496 = vmatpush3.bf16.msra.mxu1 %v2802_v60 }
 0x562   :  { %2470 = vmatprep.subr.bf16.mxu0 %v2777_v38  ;;  %2497 = vmatprep.subr.bf16.mxu1 %v2704_v33 }
 0x565   :  { %2472 = vmatpush1.bf16.msra.mxu0 %v2786_v46  ;;  %2499 = vmatpush3.bf16.msra.mxu1 %v2812_v5 }
 0x566   :  { %2474 = vmatprep.subr.bf16.mxu0 %v2789_v47  ;;  %2500 = vmatprep.subr.bf16.mxu1 %v2704_v33 }
 0x569   :  { %2476 = vmatpush1.bf16.msra.mxu0 %v2796_v55  ;;  %2502 = vmatpush3.bf16.msra.mxu1 %v2820_v10 }
 0x56a   :  { %2478 = vmatprep.subr.bf16.mxu0 %v2799_v56  ;;  %2503 = vmatprep.subr.bf16.mxu1 %v2704_v33 }
 0x56d   :  { %2480 = vmatpush1.bf16.msra.mxu0 %v2806_v1  ;;  %2505 = vmatpush3.bf16.msra.mxu1 %v2825_v15 }
 0x56e   :  { %2482 = vmatprep.subr.bf16.mxu0 %v2809_v2  ;;  %2506 = vmatprep.subr.bf16.mxu1 %v2704_v33 }
 0x571   :  { %2484 = vmatpush1.bf16.msra.mxu0 %v2816_v9  ;;  %2508 = vmatpush3.bf16.msra.mxu1 %v2833_v20 }
 0x572   :  { %2510 = vmatprep.subr.bf16.mxu0 %v2741_v7  ;;  %2541 = vmatprep.subr.bf16.mxu1 %v2704_v33 }
 0x627   :  { %v1191_v41 = vpop.f32.mrb[14].mxu0  ;;  %v1262_v44 = vpop.f32.mrb[12].mxu1 }
 0x628   :  { %v1267_v49 = vrot.slane %v1191_v41, 6  ;;  %v1193_v50 = vpop.f32.mrb[15].mxu0  ;;  %v2046_v48 = vpop.f32.mrb[13].mxu1  ;;  %v1286_v62 = vadd.f32 %v1262_v44, %v2884_v4 }
 0x629   :  { %v1277_v52 = vrot.slane %v1193_v50, 6 }
 0x62a   :  { %v1269_v53 = vadd.f32 %v1267_v49, %v2872_v40  ;;  %v1288_v63 = vrot.slane %v1286_v62, 6 }
 0x62b   :  { %v1279_v54 = vadd.f32 %v1277_v52, %v2876_v45 }
 0x62c   :  { %v1687_v57 = vmul.f32 -1.442695, %v1269_v53 }
 0x62d   :  { %v1688_v58 = vmul.f32 -1.442695, %v1279_v54 }
 0x62e   :  { %2622 = vpow2.f32 %v1687_v57 }
 0x62f   :  { %2624 = vpow2.f32 %v1688_v58 }
 0x638   :  { %v2623_v59 = vpop.eup %2622 }
 0x639   :  { %v2625_v61 = vpop.eup %2624  ;;  %v1273_v14 = vadd.f32 1.0, %v2623_v59 }
 0x63a   :  { %v1283_v7 = vadd.f32 1.0, %v2625_v61 }
 0x63b   :  { %2626 = vrcp.f32 %v1273_v14 }
 0x63c   :  { %2628 = vrcp.f32 %v1283_v7 }
 0x645   :  { %v2627_v3 = vpop.eup %2626 }
 0x646   :  { %v2629_v8 = vpop.eup %2628  ;;  %v1290_v13 = vmul.f32 %v2627_v3, %v1288_v63 }
 0x647   :  { %v1298_v16 = vmul.f32 %v2629_v8, %v1296_v6  ;;  %v1293_v21 = vsub.f32 1.0, %v2629_v8 }
 0x648   :  { %v1291_v19 = vadd.f32 %v1290_v13, %v2874_v43 }
 0x64a   :  { %2630 = vtanh.f32 %v1291_v19 }
 0x654   :  { %v2631_v22 = vpop.eup %2630 }
 0x655   :  { %v1294_v24 = vmul.f32 %v2631_v22, %v1293_v21 }
 0x657   :  { %v1299_v25 = vadd.f32 %v1298_v16, %v1294_v24 }
 0x659   :  { %v1301_v27 = vrot.slane %v1299_v25, 2 }
 0x65b   :  { %1368 = vmatmul.mubr.f32.vlgmr.msra.gmra.mrb[16].mxu0 %v1301_v27  ;;  %2080 = vmatmul.mubr.f32.vlgmr.msra.gmra.mrb[14].mxu1 %v1301_v27 }
 0x65c   :  { %2512 = vmatpush1.bf16.msra.mxu0 %v2744_v11  ;;  %2543 = vmatpush3.bf16.msra.mxu1 %v2770_v34 }
 0x65d   :  { %2514 = vmatprep.subr.bf16.mxu0 %v2746_v12  ;;  %2544 = vmatprep.subr.bf16.mxu1 %v2704_v33 }
 0x65e   :  { %1544 = vmatprep.mubr.f32.mxu0 %v2703_v0  ;;  %2114 = vmatprep.mubr.msk.f32.mxu1 %vm2705_vm2, %v2703_v0 }
 0x660   :  { %2516 = vmatpush1.bf16.msra.mxu0 %v2751_v17  ;;  %2546 = vmatpush3.bf16.msra.mxu1 %v2780_v42 }
 0x661   :  { %2518 = vmatprep.subr.bf16.mxu0 %v2754_v18  ;;  %2547 = vmatprep.subr.bf16.mxu1 %v2704_v33 }
 0x664   :  { %2520 = vmatpush1.bf16.msra.mxu0 %v2757_v23  ;;  %2549 = vmatpush3.bf16.msra.mxu1 %v2792_v51 }
 0x665   :  { %2522 = vmatprep.subr.bf16.mxu0 %v2760_v26  ;;  %2550 = vmatprep.subr.bf16.mxu1 %v2704_v33 }
 0x668   :  { %2524 = vmatpush1.bf16.msra.mxu0 %v2773_v35  ;;  %2552 = vmatpush3.bf16.msra.mxu1 %v2802_v60  ;;  %v1473_v60 = vrot.slane %v1299_v25, 6 }
 0x669   :  { %2526 = vmatprep.subr.bf16.mxu0 %v2777_v38  ;;  %2553 = vmatprep.subr.bf16.mxu1 %v2704_v33 }
 0x66c   :  { %2528 = vmatpush1.bf16.msra.mxu0 %v2786_v46  ;;  %2555 = vmatpush3.bf16.msra.mxu1 %v2812_v5 }
 0x66d   :  { %2530 = vmatprep.subr.bf16.mxu0 %v2789_v47  ;;  %2556 = vmatprep.subr.bf16.mxu1 %v2704_v33 }
 0x670   :  { %2532 = vmatpush1.bf16.msra.mxu0 %v2796_v55  ;;  %2558 = vmatpush3.bf16.msra.mxu1 %v2820_v10 }
 0x671   :  { %2534 = vmatprep.subr.bf16.mxu0 %v2799_v56  ;;  %2559 = vmatprep.subr.bf16.mxu1 %v2704_v33 }
 0x674   :  { %2536 = vmatpush1.bf16.msra.mxu0 %v2806_v1  ;;  %2561 = vmatpush3.bf16.msra.mxu1 %v2825_v15 }
 0x675   :  { %2538 = vmatprep.subr.bf16.mxu0 %v2809_v2  ;;  %2562 = vmatprep.subr.bf16.mxu1 %v2704_v33 }
 0x678   :  { %2540 = vmatpush1.bf16.msra.mxu0 %v2816_v9  ;;  %2564 = vmatpush3.bf16.msra.mxu1 %v2833_v20 }
 0x72e   :  { %v1369_v0 = vpop.f32.mrb[16].mxu0  ;;  %v1440_v11 = vpop.f32.mrb[14].mxu1 }
 0x72f   :  { %v1445_v12 = vrot.slane %v1369_v0, 4  ;;  %v1371_v17 = vpop.f32.mrb[17].mxu0  ;;  %v2081_v18 = vpop.f32.mrb[15].mxu1  ;;  %v1464_v51 = vadd.f32 %v1440_v11, %v2884_v4 }
 0x730   :  { %v1455_v23 = vrot.slane %v1371_v17, 4 }
 0x731   :  { %v1447_v26 = vadd.f32 %v1445_v12, %v2872_v40  ;;  %v1466_v55 = vrot.slane %v1464_v51, 4 }
 0x732   :  { %v1457_v34 = vadd.f32 %v1455_v23, %v2876_v45 }
 0x733   :  { %v1689_v35 = vmul.f32 -1.442695, %v1447_v26 }
 0x734   :  { %v1690_v38 = vmul.f32 -1.442695, %v1457_v34 }
 0x735   :  { %2632 = vpow2.f32 %v1689_v35 }
 0x736   :  { %2634 = vpow2.f32 %v1690_v38 }
 0x73f   :  { %v2633_v42 = vpop.eup %2632 }
 0x740   :  { %v2635_v33 = vpop.eup %2634  ;;  %v1451_v46 = vadd.f32 1.0, %v2633_v42 }
 0x741   :  { %v1461_v47 = vadd.f32 1.0, %v2635_v33 }
 0x742   :  { %2636 = vrcp.f32 %v1451_v46 }
 0x743   :  { %2638 = vrcp.f32 %v1461_v47 }
 0x74c   :  { %v2637_v56 = vpop.eup %2636 }
 0x74d   :  { %v2639_v1 = vpop.eup %2638  ;;  %v1468_v2 = vmul.f32 %v2637_v56, %v1466_v55 }
 0x74e   :  { %v1475_v5 = vmul.f32 %v2639_v1, %v1473_v60  ;;  %v1471_v10 = vsub.f32 1.0, %v2639_v1 }
 0x74f   :  { %v1469_v9 = vadd.f32 %v1468_v2, %v2874_v43 }
 0x751   :  { %2640 = vtanh.f32 %v1469_v9 }
 0x75b   :  { %v2641_v15 = vpop.eup %2640 }
 0x75c   :  { %v1472_v20 = vmul.f32 %v2641_v15, %v1471_v10 }
 0x75e   :  { %v1476_v28 = vadd.f32 %v1475_v5, %v1472_v20 }
 0x760   :  { %v1478_v29 = vrot.slane %v1476_v28, 4  ;;  %v1650_v61 = vrot.slane %v1476_v28, 6 }
 0x762   :  { %1545 = vmatmul.mubr.f32.vlgmr.msra.gmra.mrb[18].mxu0 %v1478_v29  ;;  %2115 = vmatmul.mubr.f32.vlgmr.msra.gmra.mrb[16].mxu1 %v1478_v29 }
 0x835   :  { %v1546_v30 = vpop.f32.mrb[18].mxu0  ;;  %v1617_v31 = vpop.f32.mrb[16].mxu1 }
 0x836   :  { %v1622_v32 = vrot.slane %v1546_v30, 2  ;;  %v1548_v36 = vpop.f32.mrb[19].mxu0  ;;  %v2116_v37 = vpop.f32.mrb[17].mxu1  ;;  %v1641_v57 = vadd.f32 %v1617_v31, %v2884_v4 }
 0x837   :  { %v1632_v39 = vrot.slane %v1548_v36, 2 }
 0x838   :  { %v1624_v41 = vadd.f32 %v1622_v32, %v2872_v40  ;;  %v1643_v58 = vrot.slane %v1641_v57, 2 }
 0x839   :  { %v1634_v44 = vadd.f32 %v1632_v39, %v2876_v45 }
 0x83a   :  { %v1691_v49 = vmul.f32 -1.442695, %v1624_v41 }
 0x83b   :  { %v1692_v50 = vmul.f32 -1.442695, %v1634_v44 }
 0x83c   :  { %2642 = vpow2.f32 %v1691_v49 }
 0x83d   :  { %2644 = vpow2.f32 %v1692_v50 }
 0x846   :  { %v2643_v48 = vpop.eup %2642 }
 0x847   :  { %v2645_v52 = vpop.eup %2644  ;;  %v1628_v53 = vadd.f32 1.0, %v2643_v48 }
 0x848   :  { %v1638_v54 = vadd.f32 1.0, %v2645_v52 }
 0x849   :  { %2646 = vrcp.f32 %v1628_v53 }
 0x84a   :  { %2648 = vrcp.f32 %v1638_v54 }
 0x853   :  { %v2647_v59 = vpop.eup %2646 }
 0x854   :  { %v2649_v14 = vpop.eup %2648  ;;  %v1645_v7 = vmul.f32 %v2647_v59, %v1643_v58 }
 0x855   :  { %v1652_v40 = vmul.f32 %v2649_v14, %v1650_v61  ;;  %v1648_v62 = vsub.f32 1.0, %v2649_v14 }
 0x856   :  { %v1646_v45 = vadd.f32 %v1645_v7, %v2874_v43 }
 0x858   :  { %2650 = vtanh.f32 %v1646_v45 }
 0x862   :  { %v2651_v63 = vpop.eup %2650 }
 0x863   :  { %v1649_v3 = vmul.f32 %v2651_v63, %v1648_v62 }
 0x865   :  { %v1653_v6 = vadd.f32 %v1652_v40, %v1649_v3 }
 0x867   :  { %1654 = vst [vmem:[#allocation5 - $0x6] sm:$0xc0] %v1653_v6 }
 0x868   :  { %2685 = shalt.err (!%p2682_p12)
}
 0x869   :  { %s2686_s30 = scalar_lea.hbm %s3148_s2, 32 }
 0x86a   :  { %p2687_p13 = scmp.ne.s32.totalorder %s3148_s2, %s2686_s30  ;;  %p2690_p0 = scmp.lt.u32.totalorder %s2686_s30, %s3148_s2 }
 0x86c   :  { %p2692_p1 = pnand %p2690_p0, %p2687_p13 }
 0x86e   :  { %2695 = shalt.err (!%p2692_p1)
}
 0x86f   :  { %1664 = dma.vmem_to_hbm [thread:$0]  %s1662_s26, 32, %s3148_s2, [#allocation4]  }
 0x870   :  { %2698 = dma.done.wait [#allocation4], 32  }
 0x871   :  { %2699 = vsyncadd [#allocation4], 4294967264 }
 0x872   :  { %1668 = vsyncpa [#allocation3], 1 }
 0x873   :  { %1669 = vsyncpa [#allocation4], 1 }

</bundles_post_ra>
